<compile_context>
chip_gen: v6e
topology: v6e:2x2x1
jax: 0.10.0
libtpu: 0.0.40
codegen_flags: <defaults>
</compile_context>

<pallas_src>
import functools
import math

import jax
import jax.numpy as jnp
from jax.experimental import pallas as pl
from jax.experimental.pallas import tpu as pltpu

LANE = 128   # vreg lane width
SUB = 32     # rows per in-kernel chunk; also int8 native sublane tiling


def _round_up(v, m):
    return ((v + m - 1) // m) * m


def _focal_loss_kernel(x_ref, t_ref, out_ref, *, num_classes, gamma, alpha,
                       chunks):
    """Per-tile focal loss, chunked over sublanes, class dimension unrolled.

    x_ref:   (1, C, S, 128)  logits tile (original dtype; cast per chunk)
    t_ref:   (1, 1, S, 128)  int8 targets (sentinel == C on padded / OOB rows)
    out_ref: (1, 8, 128)     f32 per-lane partial sums for this pixel tile,
                             accumulated across the inner (batch) grid axis.
    """
    n = pl.program_id(1)            # batch index (reduction axis)
    C = num_classes

    def chunk_fn(i, acc):
        s0 = pl.multiple_of(i * SUB, SUB)
        # int8 -> int32 once per chunk so every mask lines up with f32 vregs.
        t = t_ref[0, 0, pl.ds(s0, SUB), :].astype(jnp.int32)      # (SUB, 128)

        def load(c):
            return x_ref[0, c, pl.ds(s0, SUB), :].astype(jnp.float32)

        # Pass 1: per-pixel max over classes (VPU only, no cross-lane reduce).
        m = load(0)
        for c in range(1, C):
            m = jnp.maximum(m, load(c))

        # Pass 2 (fused): softmax sum + gathers, one mask / one subtract per class.
        ssum = jnp.zeros_like(m)
        d_t = jnp.zeros_like(m)     # x_t - m  (gathered)
        e_t = jnp.zeros_like(m)     # exp(x_t - m) (gathered, reused for pt)
        if alpha is not None:
            a_t = jnp.zeros_like(m)
        for c in range(C):
            d = load(c) - m
            e = jnp.exp(d)
            ssum = ssum + e
            sel = t == c
            d_t = jnp.where(sel, d, d_t)
            e_t = jnp.where(sel, e, e_t)
            if alpha is not None:
                a_t = jnp.where(sel, jnp.float32(alpha[c]), a_t)

        lse = jnp.log(ssum)
        logpt = d_t - lse
        # pt reuses the exp already computed for the softmax sum (no second exp).
        # TODO(synk): on v7x, swap the divide for pl.reciprocal(ssum, approx=True)
        # plus one Newton step to shorten the EUP chain further.
        pt = e_t / ssum
        w = 1.0 - pt

        gi = int(gamma)
        if float(gamma) == gi and 0 <= gi <= 16:
            if gi == 0:
                focal = jnp.ones_like(w)
            else:
                focal = w
                for _ in range(gi - 1):        # integer gamma: VPU multiplies
                    focal = focal * w
        else:
            focal = w ** jnp.float32(gamma)    # non-integer gamma fallback

        if alpha is not None:
            logpt = logpt * a_t
        loss = -(focal * logpt)                # (SUB, 128)

        # Sentinel (== C), padded/OOB-garbage rows and out-of-range labels
        # contribute exactly 0 (select masks any NaN/Inf from garbage logits).
        loss = jnp.where(jnp.logical_and(t >= 0, t < C), loss, 0.0)

        # Fold the (SUB, 128) chunk into an (8, 128) per-lane partial sum with
        # static, vreg-aligned slices (no XLU reduce in the hot loop).
        part = loss[0:8, :]
        for k in range(8, SUB, 8):
            part = part + loss[k:k + 8, :]
        return acc + part

    acc = jax.lax.fori_loop(
        0, chunks, chunk_fn, jnp.zeros((8, LANE), jnp.float32),
        unroll=2 if chunks >= 2 else 1)

    @pl.when(n == 0)
    def _init():
        out_ref[...] = jnp.zeros_like(out_ref)

    out_ref[...] += acc[None]


def focal_loss(x, target, *, gamma=2.0, alpha=None, size_average=True,
               max_sublanes_per_tile=512):
    """Pallas TPU implementation of FocalLoss.forward.

    x:      logits, (M, C) or (N, C, *spatial)  (NCHW is the fast path)
    target: integer class labels, (M,) or (N, *spatial)
    """
    x = jnp.asarray(x)
    target = jnp.asarray(target)

    if x.ndim > 2:
        # Fast path: consume NCHW directly as (N, C, P) — no transpose and
        # (when H*W is a multiple of 128) no logits copy at all.
        N, C = int(x.shape[0]), int(x.shape[1])
        P = math.prod(int(d) for d in x.shape[2:])
        xr = x.reshape(N, C, P)
        tr = target.reshape(N, P)
    else:
        # Slow path: (M, C) needs a full HBM relayout to put rows on lanes.
        # TODO(synk): dedicated (M, C)-layout kernel (C on lanes, one-hot gather)
        # to avoid this transpose for pure classification workloads.
        M0, C = int(x.shape[0]), int(x.shape[1])
        N, P = 1, M0
        xr = jnp.transpose(x)[None]              # (1, C, M)
        tr = target.reshape(1, P)
    M = N * P                                    # true number of rows/pixels

    if C > 64:
        # TODO(synk): reduction-over-class-axis variant for large C.
        raise NotImplementedError("focal_loss Pallas kernel supports C <= 64")

    # ---- alpha handling (mirrors the PyTorch module's __init__) ----
    if alpha is None:
        alpha_list = None
    elif isinstance(alpha, (float, int)):
        # Matches the PyTorch module ([alpha, 1-alpha]); only meaningful for C==2.
        alpha_list = [float(alpha), 1.0 - float(alpha)]
    else:
        alpha_list = [float(a) for a in jnp.asarray(alpha).reshape(-1).tolist()]
    if alpha_list is not None:
        if len(alpha_list) < C:
            raise ValueError(
                f"alpha has {len(alpha_list)} entries but input has {C} classes")
        alpha_list = tuple(alpha_list[:C])

    # ---- tile geometry: pixels fill the (sublane, lane) plane ----
    R = -(-P // LANE)                        # rows of 128 pixels
    R_x = max(R, SUB)                        # never let block height exceed array
    pad_x = R_x * LANE - P                   # nonzero only if P%128!=0 or tiny
    if pad_x:
        xr = jnp.pad(xr, ((0, 0), (0, 0), (0, pad_x)))
    xr = xr.reshape(N, C, R_x, LANE)         # metadata-only when pad_x == 0

    itemsize = jnp.dtype(x.dtype).itemsize
    try:
        info = pltpu.get_tpu_info()
        vmem_cap = int(getattr(info, "vmem_capacity_bytes", 64 << 20))
    except Exception:  # pragma: no cover - conservative fallback
        vmem_cap = 64 << 20
    if vmem_cap >= 96 << 20:
        budget, vmem_limit = 24 << 20, 64 << 20     # v5e/v6e: 128 MiB VMEM
    else:
        budget, vmem_limit = 12 << 20, 32 << 20     # v7x: 64 MiB VMEM, 2 cores

    per_row = 2 * LANE * (C * itemsize + 1)         # dbl-buffered logits + i8 tgt
    s_budget = max(SUB, (budget // per_row) // SUB * SUB)
    S = min(int(max_sublanes_per_tile), int(s_budget), (R_x // SUB) * SUB)
    S = max(SUB, (S // SUB) * SUB)
    num_tiles = -(-R_x // S)
    Rp = num_tiles * S

    # Targets: int8 stream (1 B/pixel), padded with sentinel == C so every row
    # the kernel may touch (incl. garbage rows of the last partial edge block
    # of the *unpadded* logits) contributes exactly zero loss.
    tr = tr.astype(jnp.int8)
    pad_t = Rp * LANE - P
    if pad_t:
        tr = jnp.pad(tr, ((0, 0), (0, pad_t)), constant_values=C)
    tr = tr.reshape(N, 1, Rp, LANE)

    kernel = functools.partial(
        _focal_loss_kernel, num_classes=C, gamma=float(gamma),
        alpha=alpha_list, chunks=S // SUB)

    out = pl.pallas_call(
        kernel,
        out_shape=jax.ShapeDtypeStruct((num_tiles, 8, LANE), jnp.float32),
        grid_spec=pltpu.PrefetchScalarGridSpec(
            num_scalar_prefetch=0,
            grid=(num_tiles, N),                  # pixel tiles x batch(reduce)
            in_specs=[
                pl.BlockSpec((1, C, S, LANE), lambda j, n: (n, 0, j, 0)),
                pl.BlockSpec((1, 1, S, LANE), lambda j, n: (n, 0, j, 0)),
            ],
            out_specs=pl.BlockSpec((1, 8, LANE), lambda j, n: (j, 0, 0)),
        ),
        compiler_params=pltpu.CompilerParams(
            # Axis 0 is independent across pixel tiles; on v7x it shards across
            # both TensorCores (switch to pltpu.CORE_PARALLEL if a trace shows
            # it staying on one core).
            dimension_semantics=("parallel", "arbitrary"),
            vmem_limit_bytes=vmem_limit),
    )(xr, tr)

    total = jnp.sum(out)                          # tiny final reduction in JAX
    if size_average:
        return total / jnp.float32(M)
    return total


def _focal_loss_ref(x, target, gamma=2.0, alpha=None, size_average=True):
    """Pure-JAX reference mirroring the PyTorch module (for sanity check)."""
    if x.ndim > 2:
        N, C = x.shape[0], x.shape[1]
        x = jnp.transpose(x.reshape(N, C, -1), (0, 2, 1)).reshape(-1, C)
    t = jnp.asarray(target).reshape(-1)
    log_sm = jax.nn.log_softmax(x, axis=1)
    logpt = jnp.take_along_axis(log_sm, t[:, None], axis=1)[:, 0]
    pt = jnp.exp(logpt)
    if alpha is not None:
        a = jnp.asarray(alpha, jnp.float32)
        logpt = logpt * a[t]
    loss = -1.0 * (1.0 - pt) ** gamma * logpt
    return loss.mean() if size_average else loss.sum()


if __name__ == "__main__":
    key = jax.random.PRNGKey(0)
    k1, k2, k3, k4 = jax.random.split(key, 4)

    # Test 1: per-class alpha weights, mean reduction (tiny image -> pad path).
    N, C, H, W = 2, 4, 16, 16
    logits = jax.random.normal(k1, (N, C, H, W), dtype=jnp.float32)
    labels = jax.random.randint(k2, (N, H, W), 0, C, dtype=jnp.int32)
    alpha = [0.1, 0.2, 0.3, 0.4]

    out = focal_loss(logits, labels, gamma=2.0, alpha=alpha, size_average=True)
    out = jax.block_until_ready(out)
    ref = _focal_loss_ref(logits, labels, gamma=2.0, alpha=alpha,
                          size_average=True)
    assert jnp.allclose(out, ref, rtol=1e-5, atol=1e-6), (out, ref)

    # Test 2: alpha=None / sum-reduction fast path.
    out2 = focal_loss(logits, labels, gamma=2.0, alpha=None, size_average=False)
    out2 = jax.block_until_ready(out2)
    ref2 = _focal_loss_ref(logits, labels, gamma=2.0, alpha=None,
                           size_average=False)
    assert jnp.allclose(out2, ref2, rtol=1e-5, atol=1e-5), (out2, ref2)

    # Test 3: zero-copy logits path (H*W multiple of 128) with a ragged last
    # tile (partial edge block / sentinel masking) and a multi-chunk fori body.
    N3, C3, H3, W3 = 2, 4, 96, 96
    logits3 = jax.random.normal(k3, (N3, C3, H3, W3), dtype=jnp.float32)
    labels3 = jax.random.randint(k4, (N3, H3, W3), 0, C3, dtype=jnp.int32)
    out3 = focal_loss(logits3, labels3, gamma=2.0, alpha=None,
                      size_average=True)
    out3 = jax.block_until_ready(out3)
    ref3 = _focal_loss_ref(logits3, labels3, gamma=2.0, alpha=None,
                           size_average=True)
    assert jnp.allclose(out3, ref3, rtol=1e-5, atol=1e-6), (out3, ref3)

    print("KERNEL_OK")
</pallas_src>

<mosaic_0001>
module attributes {stable_mosaic.version = 11 : i64} {
  func.func @_focal_loss_kernel(%arg0: i32, %arg1: i32, %arg2: memref<1x4x32x128xf32, #tpu.memory_space<vmem>>, %arg3: memref<1x1x32x128xi8, #tpu.memory_space<vmem>>, %arg4: memref<1x8x128xf32, #tpu.memory_space<vmem>>) attributes {dimension_semantics = [#tpu.dimension_semantics<parallel>, #tpu.dimension_semantics<arbitrary>], iteration_bounds = array<i64: 1, 2>, scalar_prefetch = 0 : i64, scratch_operands = 0 : i64, tpu.core_type = #tpu.core_type<tc>, window_params = [{transform_indices = @transform_0, window_bounds = array<i64: 1, 4, 32, 128>}, {transform_indices = @transform_1, window_bounds = array<i64: 1, 1, 32, 128>}, {transform_indices = @transform_2, window_bounds = array<i64: 1, 8, 128>}]} {
    %cst = arith.constant 0.000000e+00 : f32
    %0 = vector.broadcast %cst : f32 to vector<8x128xf32>
    %c0_i32 = arith.constant 0 : i32
    %c32_i32 = arith.constant 32 : i32
    %1 = arith.muli %c0_i32, %c32_i32 : i32
    %2 = tpu.assume_multiple %1, 32 : i32
    %c0 = arith.constant 0 : index
    %c0_0 = arith.constant 0 : index
    %3 = arith.index_cast %2 : i32 to index
    %c0_1 = arith.constant 0 : index
    %4 = vector.load %arg3[%c0, %c0_0, %3, %c0_1] : memref<1x1x32x128xi8, #tpu.memory_space<vmem>>, vector<1x1x32x128xi8>
    %5 = vector.shape_cast %4 : vector<1x1x32x128xi8> to vector<32x128xi8>
    %6 = arith.extsi %5 : vector<32x128xi8> to vector<32x128xi32>
    %c0_2 = arith.constant 0 : index
    %c0_3 = arith.constant 0 : index
    %7 = arith.index_cast %2 : i32 to index
    %c0_4 = arith.constant 0 : index
    %8 = vector.load %arg2[%c0_2, %c0_3, %7, %c0_4] : memref<1x4x32x128xf32, #tpu.memory_space<vmem>>, vector<1x1x32x128xf32>
    %9 = vector.shape_cast %8 : vector<1x1x32x128xf32> to vector<32x128xf32>
    %c0_5 = arith.constant 0 : index
    %c1 = arith.constant 1 : index
    %10 = arith.index_cast %2 : i32 to index
    %c0_6 = arith.constant 0 : index
    %11 = vector.load %arg2[%c0_5, %c1, %10, %c0_6] : memref<1x4x32x128xf32, #tpu.memory_space<vmem>>, vector<1x1x32x128xf32>
    %12 = vector.shape_cast %11 : vector<1x1x32x128xf32> to vector<32x128xf32>
    %13 = arith.maximumf %9, %12 : vector<32x128xf32>
    %c0_7 = arith.constant 0 : index
    %c2 = arith.constant 2 : index
    %14 = arith.index_cast %2 : i32 to index
    %c0_8 = arith.constant 0 : index
    %15 = vector.load %arg2[%c0_7, %c2, %14, %c0_8] : memref<1x4x32x128xf32, #tpu.memory_space<vmem>>, vector<1x1x32x128xf32>
    %16 = vector.shape_cast %15 : vector<1x1x32x128xf32> to vector<32x128xf32>
    %17 = arith.maximumf %13, %16 : vector<32x128xf32>
    %c0_9 = arith.constant 0 : index
    %c3 = arith.constant 3 : index
    %18 = arith.index_cast %2 : i32 to index
    %c0_10 = arith.constant 0 : index
    %19 = vector.load %arg2[%c0_9, %c3, %18, %c0_10] : memref<1x4x32x128xf32, #tpu.memory_space<vmem>>, vector<1x1x32x128xf32>
    %20 = vector.shape_cast %19 : vector<1x1x32x128xf32> to vector<32x128xf32>
    %21 = arith.maximumf %17, %20 : vector<32x128xf32>
    %cst_11 = arith.constant 0.000000e+00 : f32
    %22 = vector.broadcast %cst_11 : f32 to vector<32x128xf32>
    %cst_12 = arith.constant 0.000000e+00 : f32
    %23 = vector.broadcast %cst_12 : f32 to vector<32x128xf32>
    %cst_13 = arith.constant 0.000000e+00 : f32
    %24 = vector.broadcast %cst_13 : f32 to vector<32x128xf32>
    %cst_14 = arith.constant 0.000000e+00 : f32
    %25 = vector.broadcast %cst_14 : f32 to vector<32x128xf32>
    %c0_15 = arith.constant 0 : index
    %c0_16 = arith.constant 0 : index
    %26 = arith.index_cast %2 : i32 to index
    %c0_17 = arith.constant 0 : index
    %27 = vector.load %arg2[%c0_15, %c0_16, %26, %c0_17] : memref<1x4x32x128xf32, #tpu.memory_space<vmem>>, vector<1x1x32x128xf32>
    %28 = vector.shape_cast %27 : vector<1x1x32x128xf32> to vector<32x128xf32>
    %29 = arith.subf %28, %21 : vector<32x128xf32>
    %30 = math.exp %29 : vector<32x128xf32>
    %31 = arith.addf %22, %30 : vector<32x128xf32>
    %c0_i32_18 = arith.constant 0 : i32
    %32 = vector.broadcast %c0_i32_18 : i32 to vector<32x128xi32>
    %33 = arith.cmpi eq, %6, %32 : vector<32x128xi32>
    %34 = arith.select %33, %29, %23 : vector<32x128xi1>, vector<32x128xf32>
    %35 = arith.select %33, %30, %24 : vector<32x128xi1>, vector<32x128xf32>
    %cst_19 = arith.constant 1.000000e-01 : f32
    %36 = vector.broadcast %cst_19 : f32 to vector<32x128xf32>
    %37 = arith.select %33, %36, %25 : vector<32x128xi1>, vector<32x128xf32>
    %c0_20 = arith.constant 0 : index
    %c1_21 = arith.constant 1 : index
    %38 = arith.index_cast %2 : i32 to index
    %c0_22 = arith.constant 0 : index
    %39 = vector.load %arg2[%c0_20, %c1_21, %38, %c0_22] : memref<1x4x32x128xf32, #tpu.memory_space<vmem>>, vector<1x1x32x128xf32>
    %40 = vector.shape_cast %39 : vector<1x1x32x128xf32> to vector<32x128xf32>
    %41 = arith.subf %40, %21 : vector<32x128xf32>
    %42 = math.exp %41 : vector<32x128xf32>
    %43 = arith.addf %31, %42 : vector<32x128xf32>
    %c1_i32 = arith.constant 1 : i32
    %44 = vector.broadcast %c1_i32 : i32 to vector<32x128xi32>
    %45 = arith.cmpi eq, %6, %44 : vector<32x128xi32>
    %46 = arith.select %45, %41, %34 : vector<32x128xi1>, vector<32x128xf32>
    %47 = arith.select %45, %42, %35 : vector<32x128xi1>, vector<32x128xf32>
    %cst_23 = arith.constant 2.000000e-01 : f32
    %48 = vector.broadcast %cst_23 : f32 to vector<32x128xf32>
    %49 = arith.select %45, %48, %37 : vector<32x128xi1>, vector<32x128xf32>
    %c0_24 = arith.constant 0 : index
    %c2_25 = arith.constant 2 : index
    %50 = arith.index_cast %2 : i32 to index
    %c0_26 = arith.constant 0 : index
    %51 = vector.load %arg2[%c0_24, %c2_25, %50, %c0_26] : memref<1x4x32x128xf32, #tpu.memory_space<vmem>>, vector<1x1x32x128xf32>
    %52 = vector.shape_cast %51 : vector<1x1x32x128xf32> to vector<32x128xf32>
    %53 = arith.subf %52, %21 : vector<32x128xf32>
    %54 = math.exp %53 : vector<32x128xf32>
    %55 = arith.addf %43, %54 : vector<32x128xf32>
    %c2_i32 = arith.constant 2 : i32
    %56 = vector.broadcast %c2_i32 : i32 to vector<32x128xi32>
    %57 = arith.cmpi eq, %6, %56 : vector<32x128xi32>
    %58 = arith.select %57, %53, %46 : vector<32x128xi1>, vector<32x128xf32>
    %59 = arith.select %57, %54, %47 : vector<32x128xi1>, vector<32x128xf32>
    %cst_27 = arith.constant 3.000000e-01 : f32
    %60 = vector.broadcast %cst_27 : f32 to vector<32x128xf32>
    %61 = arith.select %57, %60, %49 : vector<32x128xi1>, vector<32x128xf32>
    %c0_28 = arith.constant 0 : index
    %c3_29 = arith.constant 3 : index
    %62 = arith.index_cast %2 : i32 to index
    %c0_30 = arith.constant 0 : index
    %63 = vector.load %arg2[%c0_28, %c3_29, %62, %c0_30] : memref<1x4x32x128xf32, #tpu.memory_space<vmem>>, vector<1x1x32x128xf32>
    %64 = vector.shape_cast %63 : vector<1x1x32x128xf32> to vector<32x128xf32>
    %65 = arith.subf %64, %21 : vector<32x128xf32>
    %66 = math.exp %65 : vector<32x128xf32>
    %67 = arith.addf %55, %66 : vector<32x128xf32>
    %c3_i32 = arith.constant 3 : i32
    %68 = vector.broadcast %c3_i32 : i32 to vector<32x128xi32>
    %69 = arith.cmpi eq, %6, %68 : vector<32x128xi32>
    %70 = arith.select %69, %65, %58 : vector<32x128xi1>, vector<32x128xf32>
    %71 = arith.select %69, %66, %59 : vector<32x128xi1>, vector<32x128xf32>
    %cst_31 = arith.constant 4.000000e-01 : f32
    %72 = vector.broadcast %cst_31 : f32 to vector<32x128xf32>
    %73 = arith.select %69, %72, %61 : vector<32x128xi1>, vector<32x128xf32>
    %74 = math.log %67 : vector<32x128xf32>
    %75 = arith.subf %70, %74 : vector<32x128xf32>
    %76 = arith.divf %71, %67 : vector<32x128xf32>
    %cst_32 = arith.constant 1.000000e+00 : f32
    %77 = vector.broadcast %cst_32 : f32 to vector<32x128xf32>
    %78 = arith.subf %77, %76 : vector<32x128xf32>
    %79 = arith.mulf %78, %78 : vector<32x128xf32>
    %80 = arith.mulf %75, %73 : vector<32x128xf32>
    %81 = arith.mulf %79, %80 : vector<32x128xf32>
    %cst_33 = arith.constant 0.000000e+00 : f32
    %82 = vector.broadcast %cst_33 : f32 to vector<32x128xf32>
    %83 = arith.subf %82, %81 : vector<32x128xf32>
    %c0_i32_34 = arith.constant 0 : i32
    %84 = vector.broadcast %c0_i32_34 : i32 to vector<32x128xi32>
    %85 = arith.cmpi sge, %6, %84 : vector<32x128xi32>
    %c4_i32 = arith.constant 4 : i32
    %86 = vector.broadcast %c4_i32 : i32 to vector<32x128xi32>
    %87 = arith.cmpi slt, %6, %86 : vector<32x128xi32>
    %88 = arith.andi %85, %87 : vector<32x128xi1>
    %cst_35 = arith.constant 0.000000e+00 : f32
    %89 = vector.broadcast %cst_35 : f32 to vector<32x128xf32>
    %90 = arith.select %88, %83, %89 : vector<32x128xi1>, vector<32x128xf32>
    %91 = vector.extract_strided_slice %90 {offsets = [0, 0], sizes = [8, 128], strides = [1, 1]} : vector<32x128xf32> to vector<8x128xf32>
    %92 = vector.extract_strided_slice %90 {offsets = [8, 0], sizes = [8, 128], strides = [1, 1]} : vector<32x128xf32> to vector<8x128xf32>
    %93 = arith.addf %91, %92 : vector<8x128xf32>
    %94 = vector.extract_strided_slice %90 {offsets = [16, 0], sizes = [8, 128], strides = [1, 1]} : vector<32x128xf32> to vector<8x128xf32>
    %95 = arith.addf %93, %94 : vector<8x128xf32>
    %96 = vector.extract_strided_slice %90 {offsets = [24, 0], sizes = [8, 128], strides = [1, 1]} : vector<32x128xf32> to vector<8x128xf32>
    %97 = arith.addf %95, %96 : vector<8x128xf32>
    %98 = arith.addf %0, %97 : vector<8x128xf32>
    %c1_i32_36 = arith.constant 1 : i32
    %c0_i32_37 = arith.constant 0 : i32
    %99 = arith.cmpi eq, %arg1, %c0_i32_37 : i32
    %100 = arith.extui %99 : i1 to i32
    %c0_i32_38 = arith.constant 0 : i32
    %101 = arith.cmpi ne, %100, %c0_i32_38 : i32
    scf.if %101 {
      %cst_45 = arith.constant 0.000000e+00 : f32
      %106 = vector.broadcast %cst_45 : f32 to vector<1x8x128xf32>
      %c0_46 = arith.constant 0 : index
      %c0_47 = arith.constant 0 : index
      %c0_48 = arith.constant 0 : index
      %107 = vector.load %arg4[%c0_46, %c0_47, %c0_48] : memref<1x8x128xf32, #tpu.memory_space<vmem>>, vector<1x8x128xf32>
      tpu.vector_store %arg4[%c0_46, %c0_47, %c0_48], %106 {strides = array<i32>} : memref<1x8x128xf32, #tpu.memory_space<vmem>>, vector<1x8x128xf32>,
    } else {
    }
    %c0_39 = arith.constant 0 : index
    %c0_40 = arith.constant 0 : index
    %c0_41 = arith.constant 0 : index
    %102 = vector.load %arg4[%c0_39, %c0_40, %c0_41] : memref<1x8x128xf32, #tpu.memory_space<vmem>>, vector<1x8x128xf32>
    %103 = vector.shape_cast %98 : vector<8x128xf32> to vector<1x8x128xf32>
    %104 = arith.addf %102, %103 : vector<1x8x128xf32>
    %c0_42 = arith.constant 0 : index
    %c0_43 = arith.constant 0 : index
    %c0_44 = arith.constant 0 : index
    %105 = vector.load %arg4[%c0_42, %c0_43, %c0_44] : memref<1x8x128xf32, #tpu.memory_space<vmem>>, vector<1x8x128xf32>
    tpu.vector_store %arg4[%c0_42, %c0_43, %c0_44], %104 {strides = array<i32>} : memref<1x8x128xf32, #tpu.memory_space<vmem>>, vector<1x8x128xf32>,
    return
  }
  func.func @transform_0(%arg0: i32, %arg1: i32) -> (i32, i32, i32, i32) {
    %c0_i32 = arith.constant 0 : i32
    %c0_i32_0 = arith.constant 0 : i32
    %c0_i32_1 = arith.constant 0 : i32
    return %arg1, %c0_i32, %arg0, %c0_i32_0 : i32, i32, i32, i32
  }
  func.func @transform_1(%arg0: i32, %arg1: i32) -> (i32, i32, i32, i32) {
    %c0_i32 = arith.constant 0 : i32
    %c0_i32_0 = arith.constant 0 : i32
    %c0_i32_1 = arith.constant 0 : i32
    return %arg1, %c0_i32, %arg0, %c0_i32_0 : i32, i32, i32, i32
  }
  func.func @transform_2(%arg0: i32, %arg1: i32) -> (i32, i32, i32) {
    %c0_i32 = arith.constant 0 : i32
    %c0_i32_0 = arith.constant 0 : i32
    %c0_i32_1 = arith.constant 0 : i32
    return %arg0, %c0_i32, %c0_i32_0 : i32, i32, i32
  }
}

</mosaic_0001>

<bundles_post_ra>
// kernel: tpu_custom_call.1
= control target key start
LH: loop header
LB: loop body
LE: loop exit
PB: predicated region body
PF: predicated region fallthrough
CT: control target
= control target key end

     0   :  { %7 = vsyncpa [#allocation3], 0  ;;  %s1277_s0 = inlined_call_operand.hbm [shape: f32[2,4,32,128], index: 0, kind: input, shape index: {}]   ;;  %s1278_s1 = inlined_call_operand.hbm [shape: s8[2,1,32,128], index: 1, kind: input, shape index: {}]   ;;  %s1279_s2 = inlined_call_operand.hbm [shape: f32[1,8,128], index: 2, kind: output, shape index: {}]  }
   0x1   :  { %9 = vsyncpa [#allocation3 + $0x1], 0 }
   0x2   :  { %10 = vsyncpa [#allocation6], 0 }
   0x3   :  { %12 = vsyncpa [#allocation6 + $0x1], 0 }
   0x4   :  { %13 = vsyncpa [#allocation4], 0  ;;  %s857_s9 = smov 0   ;;  %s859_s10 = smov 0  }
   0x5   :  { %s861_s11 = smov 0   ;;  %s863_s12 = smov 0  }
   0x6   :  { %s865_s13 = smov 0   ;;  %s867_s14 = smov 0  }
   0x7 LB: > { %s547_s15 = sadd.s32 4294967295, %s833_s14   ;;  %s28_s16 = sadd.s32 1, %s829_s13  ;;  %s833_s14 = sphi %s867_s14, %s19_s14   ;;  %s829_s13 = sphi %s865_s13, %s1289_s13   ;;  %s825_s12 = sphi %s863_s12, %s1288_s12   ;;  %s821_s11 = sphi %s861_s11, %s1287_s11   ;;  %s817_s10 = sphi %s859_s10, %s1286_s10   ;;  %s813_s9 = sphi %s857_s9, %s1285_s9  }
   0x8   : > { %p29_p0 = scmp.ge.s32.totalorder %s28_s16, 2  ;;  %s40_s17 = sadd.s32 1, %s821_s11 }
   0x9   : > { %p47_p1 = scmp.ne.s32.totalorder %s821_s11, %s817_s10  ;;  %p48_p2 = scmp.eq.s32.totalorder %s833_s14, 0 }
   0xa   : > { %s1291_s16 = smov (%p29_p0, %s28_s16), 0  ;;  %p53_p4 = scmp.ne.s32.totalorder %s817_s10, %s813_s9 }
   0xb   : > { %p893_p3 = por %p48_p2, %p47_p1  ;;  %s35_s19 = ssub.s32 %s829_s13, %s1291_s16 }
   0xc   : > { %p54_p5 = scmp.eq.s32.totalorder %s547_s15, 0  ;;  %p38_p6 = scmp.eq.s32.totalorder %s35_s19, 0 }
   0xd   : > { %p591_p8 = scmp.lt.s32.totalorder %s833_s14, 2  ;;  %s911_s22 = sand.u32 1, %s821_s11  }
   0xe   : > { %p902_p7 = por %p54_p5, %p53_p4  ;;  %s575_s23 = sshll.u32 %s829_s13, 11 }
   0xf   : > { %s908_s21 = scalar_select %p38_p6, %s821_s11, %s40_s17  }
  0x10   : > { %s550_s24 = sshll.u32 %s911_s22, 7  ;;  %s143_s27 = scalar_lea.hbm %s1277_s0, %s575_s23 }
  0x11   : > { %s135_s28 = scalar_lea.vmem [#allocation2], %s550_s24  ;;  %p920_p9 = pnand %p591_p8, %p893_p3 }
  0x12   : > { %s144_s29 = sshll.u32 %s135_s28, 4  ;;  %s132_s3 = scalar_lea.sflag [#allocation3], %s911_s22  ;;  %s145_s29 = int_to_ptr.vmem [resolvable:$true] %s144_s29 }
  0x13   : > { %p697_p10 = pneg %p920_p9  ;;  %s708_s4 = scalar_lea.vmem %s145_s29, 2048 }
  0x14   : > { %p709_p11 = scmp.ne.s32.totalorder %s145_s29, %s708_s4  ;;  %s835_s5 = smov [#allocation2]  }
  0x15   : > { %s713_s6 = sshll.u32 %s835_s5, 4  ;;  %s714_s6 = int_to_ptr.vmem [resolvable:$false] %s713_s6 }
  0x16   : > { %p711_p12 = pnand %p709_p11, %p697_p10  ;;  %s715_s7 = scalar_lea.vmem %s714_s6, 4096 }
  0x17   : > { %p716_p0 = scmp.lt.s32.totalorder %s145_s29, %s714_s6  ;;  %p717_p1 = scmp.lt.s32.totalorder %s715_s7, %s708_s4 }
  0x18   : > { %p712_p13 = pneg %p711_p12 }
  0x19   : > { %p718_p2 = por %p717_p1, %p716_p0 }
  0x1b   : > { %p719_p3 = pnand %p718_p2, %p712_p13 }
  0x1d   : > { %722 = shalt.err (!%p719_p3)
}
  0x1e   : > { %s836_s8 = smov 128   ;;  %s837_s9 = smov 8  }
  0x1f   : > { %587 = dma.hbm_to_vmem [thread:$0]  (!%p920_p9), %s143_s27, 2048, %s145_s29, %s132_s3, %s836_s8, %s836_s8, %s837_s9  }
  0x20   : > { %p555_p4 = scmp.ge.s32.totalorder %s833_s14, 1  ;;  %p171_p5 = scmp.lt.s32.totalorder %s833_s14, 3 }
  0x21   : > { %s553_s17 = sshll.u32 %s911_s22, 3  ;;  %s554_s19 = sshll.u32 %s829_s13, 7 }
  0x22   : > { %p935_p6 = pnand %p555_p4, %p171_p5  ;;  %s158_s23 = scalar_lea.vmem [#allocation5], %s553_s17 }
  0x23   : > { %s166_s24 = sshll.u32 %s158_s23, 4  ;;  %s164_s28 = scalar_lea.hbm %s1278_s1, %s554_s19  ;;  %s167_s24 = int_to_ptr.vmem [resolvable:$true] %s166_s24 }
  0x24   : > { %s155_s4 = scalar_lea.sflag [#allocation6], %s911_s22  ;;  %s736_s5 = scalar_lea.vmem %s167_s24, 128 }
  0x25   : > { %p737_p8 = scmp.ne.s32.totalorder %s167_s24, %s736_s5  ;;  %s838_s27 = smov [#allocation5]  }
  0x26   : > { %s741_s29 = sshll.u32 %s838_s27, 4  ;;  %s742_s29 = int_to_ptr.vmem [resolvable:$false] %s741_s29 }
  0x27   : > { %p739_p11 = pnand %p737_p8, %p697_p10  ;;  %s743_s3 = scalar_lea.vmem %s742_s29, 256 }
  0x28   : > { %p744_p13 = scmp.lt.s32.totalorder %s167_s24, %s742_s29  ;;  %p745_p0 = scmp.lt.s32.totalorder %s743_s3, %s736_s5 }
  0x29   : > { %p740_p12 = pneg %p739_p11 }
  0x2a   : > { %p746_p1 = por %p745_p0, %p744_p13 }
  0x2c   : > { %p747_p2 = pnand %p746_p1, %p740_p12 }
  0x2e   : > { %750 = shalt.err (!%p747_p2)
}
  0x2f   : > { %590 = dma.hbm_to_vmem [thread:$0]  (!%p920_p9), %s164_s28, 128, %s167_s24, %s155_s4  }
  0x30   : > { %175 = sbr.rel (%p935_p6) target bundleno = 149 (0x95), region = 28  ;;  %s177_s22 = sand.u32 (!%p935_p6), 1, %s817_s10  }
  0x31   : > { %s556_s6 = sshll.u32 (!%p935_p6), %s177_s22, 7  ;;  %s178_s7 = scalar_lea.sflag (!%p935_p6), [#allocation3], %s177_s22 }
  0x32   : > { %s952_s8 = scalar_lea.vmem (!%p935_p6), [#allocation2], %s556_s6 }
  0x35   : > { %800 = dma.done.wait (%p902_p7), %s178_s7, 2048  }
  0x36   : > { %802 = vsyncadd (%p902_p7), %s178_s7, 4294965248  ;;  %s557_s9 = sshll.u32 %s177_s22, 3  ;;  %s187_s17 = scalar_lea.sflag [#allocation6], %s177_s22 }
  0x37   : > { %s958_s30 = scalar_lea.vmem [#allocation5], %s557_s9 }
  0x38   : > { %804 = dma.done.wait (%p902_p7), %s187_s17, 128  }
  0x39   : > { %806 = vsyncadd (%p902_p7), %s187_s17, 4294967168  ;;  %v217_v0 = vld [vmem:[%s952_s8] sm:$0xff]  ;;  %v218_v1 = vld [vmem:[%s952_s8 + $0x8] sm:$0xff]  ;;  %p570_p7 = scmp.ne.s32.totalorder %s825_s12, 0 }
  0x3a   : > { %v219_v2 = vld [vmem:[%s952_s8 + $0x10] sm:$0xff]  ;;  %v220_v3 = vld [vmem:[%s952_s8 + $0x18] sm:$0xff]  ;;  %v558_v4 = vld [vmem:[%s952_s8 + $0x20] sm:$0xff] }
  0x3b   : > { %v559_v5 = vld [vmem:[%s952_s8 + $0x28] sm:$0xff]  ;;  %v560_v6 = vld [vmem:[%s952_s8 + $0x30] sm:$0xff]  ;;  %v561_v7 = vld [vmem:[%s952_s8 + $0x38] sm:$0xff]  ;;  %v227_v8 = vmax.f32 %v217_v0, %v558_v4 }
  0x3c   : > { %v228_v9 = vmax.f32 %v218_v1, %v559_v5  ;;  %v229_v10 = vmax.f32 %v219_v2, %v560_v6  ;;  %v230_v11 = vmax.f32 %v220_v3, %v561_v7  ;;  %v562_v12 = vld [vmem:[%s952_s8 + $0x40] sm:$0xff]  ;;  %v563_v13 = vld [vmem:[%s952_s8 + $0x48] sm:$0xff]  ;;  %v564_v14 = vld [vmem:[%s952_s8 + $0x50] sm:$0xff] }
  0x3d   : > { %v565_v15 = vld [vmem:[%s952_s8 + $0x58] sm:$0xff]  ;;  %v237_v16 = vmax.f32 %v227_v8, %v562_v12  ;;  %v566_v17 = vld [vmem:[%s952_s8 + $0x60] sm:$0xff]  ;;  %v567_v18 = vld [vmem:[%s952_s8 + $0x68] sm:$0xff] }
  0x3e   : > { %v238_v19 = vmax.f32 %v228_v9, %v563_v13  ;;  %v239_v20 = vmax.f32 %v229_v10, %v564_v14  ;;  %v240_v21 = vmax.f32 %v230_v11, %v565_v15  ;;  %v568_v22 = vld [vmem:[%s952_s8 + $0x70] sm:$0xff]  ;;  %v569_v23 = vld [vmem:[%s952_s8 + $0x78] sm:$0xff] }
  0x3f   : > { %v247_v24 = vmax.f32 %v237_v16, %v566_v17 }
  0x40   : > { %v248_v25 = vmax.f32 %v238_v19, %v567_v18  ;;  %v249_v26 = vmax.f32 %v239_v20, %v568_v22  ;;  %v250_v27 = vmax.f32 %v240_v21, %v569_v23 }
  0x41   : > { %v980_v28 = vsub.f32 %v217_v0, %v247_v24  ;;  %v988_v32 = vsub.f32 %v558_v4, %v247_v24  ;;  %v1004_v44 = vsub.f32 %v562_v12, %v247_v24  ;;  %v1016_v52 = vsub.f32 %v566_v17, %v247_v24 }
  0x42   : > { %v982_v29 = vsub.f32 %v218_v1, %v248_v25  ;;  %v984_v30 = vsub.f32 %v219_v2, %v249_v26  ;;  %v986_v31 = vsub.f32 %v220_v3, %v250_v27  ;;  %v991_v34 = vsub.f32 %v559_v5, %v248_v25 }
  0x43   : > { %v255_v33 = vmul.f32 1.442695, %v980_v28  ;;  %v995_v37 = vsub.f32 %v560_v6, %v249_v26  ;;  %v998_v39 = vsub.f32 %v561_v7, %v250_v27  ;;  %v287_v40 = vmul.f32 1.442695, %v988_v32  ;;  %v212_v6 = vld [vmem:[%s958_s30] sm:$0xff] }
  0x44   : > { %v257_v35 = vmul.f32 1.442695, %v982_v29  ;;  %v259_v36 = vmul.f32 1.442695, %v984_v30  ;;  %v261_v38 = vmul.f32 1.442695, %v986_v31  ;;  %v1006_v45 = vsub.f32 %v563_v13, %v248_v25 }
  0x45   : > { %647 = vpow2.f32 %v255_v33  ;;  %v289_v41 = vmul.f32 1.442695, %v991_v34  ;;  %v291_v42 = vmul.f32 1.442695, %v995_v37  ;;  %v293_v43 = vmul.f32 1.442695, %v998_v39 }
  0x46   : > { %649 = vpow2.f32 %v257_v35  ;;  %v1008_v46 = vsub.f32 %v564_v14, %v249_v26  ;;  %v1010_v47 = vsub.f32 %v565_v15, %v250_v27  ;;  %v319_v48 = vmul.f32 1.442695, %v1004_v44 }
  0x47   : > { %651 = vpow2.f32 %v259_v36  ;;  %v321_v49 = vmul.f32 1.442695, %v1006_v45  ;;  %v1018_v53 = vsub.f32 %v567_v18, %v248_v25  ;;  %v1020_v54 = vsub.f32 %v568_v22, %v249_v26 }
  0x48   : > { %653 = vpow2.f32 %v261_v38  ;;  %v323_v50 = vmul.f32 1.442695, %v1008_v46  ;;  %v325_v51 = vmul.f32 1.442695, %v1010_v47  ;;  %v1022_v55 = vsub.f32 %v569_v23, %v250_v27 }
  0x49   : > { %655 = vpow2.f32 %v287_v40  ;;  %v351_v56 = vmul.f32 1.442695, %v1016_v52  ;;  %v353_v57 = vmul.f32 1.442695, %v1018_v53  ;;  %v355_v59 = vmul.f32 1.442695, %v1020_v54 }
  0x4a   : > { %657 = vpow2.f32 %v289_v41  ;;  %v357_v60 = vmul.f32 1.442695, %v1022_v55  ;;  %v1061_v13 = vunpack.c.0.s8 %v212_v6  ;;  %v1064_v15 = vunpack.c.1.s8 %v212_v6 }
  0x4b   : > { %659 = vpow2.f32 %v291_v42  ;;  %v1066_v16 = vunpack.c.2.s8 %v212_v6  ;;  %v1068_v17 = vunpack.c.3.s8 %v212_v6  ;;  %v839_v27 = vmov 0.0  }
  0x4c   : > { %661 = vpow2.f32 %v293_v43  ;;  %vm267_vm0 = vcmp.eq.s32.totalorder %v1061_v13, 0  ;;  %vm268_vm1 = vcmp.eq.s32.totalorder %v1064_v15, 0  ;;  %vm299_vm4 = vcmp.eq.s32.totalorder %v1061_v13, 1 }
  0x4d   : > { %663 = vpow2.f32 %v319_v48  ;;  %vm269_vm2 = vcmp.eq.s32.totalorder %v1066_v16, 0  ;;  %vm270_vm3 = vcmp.eq.s32.totalorder %v1068_v17, 0  ;;  %v279_v33 = vsel %vm267_vm0, 0.1, %v839_v27 }
  0x4e   : > { %665 = vpow2.f32 %v321_v49  ;;  %v280_v35 = vsel %vm268_vm1, 0.1, %v839_v27  ;;  %v271_v38 = vsel %vm267_vm0, %v980_v28, 0.0  ;;  %v281_v40 = vsel %vm269_vm2, 0.1, %v839_v27 }
  0x4f   : > { %667 = vpow2.f32 %v323_v50  ;;  %v272_v42 = vsel %vm268_vm1, %v982_v29, 0.0  ;;  %v273_v43 = vsel %vm269_vm2, %v984_v30, 0.0  ;;  %v274_v48 = vsel %vm270_vm3, %v986_v31, 0.0 }
  0x50   : > { %669 = vpow2.f32 %v325_v51  ;;  %v282_v28 = vsel %vm270_vm3, 0.1, %v839_v27  ;;  %vm300_vm5 = vcmp.eq.s32.totalorder %v1064_v15, 1  ;;  %vm301_vm6 = vcmp.eq.s32.totalorder %v1066_v16, 1 }
  0x51   : > { %671 = vpow2.f32 %v351_v56  ;;  %vm302_vm7 = vcmp.eq.s32.totalorder %v1068_v17, 1  ;;  %v303_v29 = vsel %vm299_vm4, %v988_v32, %v271_v38  ;;  %v304_v30 = vsel %vm300_vm5, %v991_v34, %v272_v42 }
  0x52   : > { %v1026_v58 = vpop.eup %647  ;;  %673 = vpow2.f32 %v353_v57  ;;  %v305_v31 = vsel %vm301_vm6, %v995_v37, %v273_v43  ;;  %v306_v49 = vsel %vm302_vm7, %v998_v39, %v274_v48  ;;  %v311_v32 = vsel %vm299_vm4, 0.2, %v279_v33 }
  0x53   : > { %v1030_v61 = vpop.eup %649  ;;  %675 = vpow2.f32 %v355_v59  ;;  %v275_v50 = vsel %vm267_vm0, %v1026_v58, 0.0  ;;  %v312_v51 = vsel %vm300_vm5, 0.2, %v280_v35  ;;  %v313_v37 = vsel %vm301_vm6, 0.2, %v281_v40 }
  0x54   : > { %v1032_v62 = vpop.eup %651  ;;  %677 = vpow2.f32 %v357_v60  ;;  %v276_v34 = vsel %vm268_vm1, %v1030_v61, 0.0  ;;  %v314_v39 = vsel %vm302_vm7, 0.2, %v282_v28  ;;  %vm331_vm8 = vcmp.eq.s32.totalorder %v1061_v13, 2 }
  0x55   : > { %v1034_v63 = vpop.eup %653  ;;  %v277_v56 = vsel %vm269_vm2, %v1032_v62, 0.0  ;;  %vm332_vm9 = vcmp.eq.s32.totalorder %v1064_v15, 2  ;;  %vm333_vm10 = vcmp.eq.s32.totalorder %v1066_v16, 2  ;;  %vm334_vm11 = vcmp.eq.s32.totalorder %v1068_v17, 2 }
  0x56   : > { %v1036_v0 = vpop.eup %655  ;;  %v278_v57 = vsel %vm270_vm3, %v1034_v63, 0.0  ;;  %v335_v59 = vsel %vm331_vm8, %v1004_v44, %v303_v29  ;;  %vm363_vm12 = vcmp.eq.s32.totalorder %v1061_v13, 3  ;;  %vm364_vm13 = vcmp.eq.s32.totalorder %v1064_v15, 3 }
  0x57   : > { %v1038_v1 = vpop.eup %657  ;;  %v295_v4 = vadd.f32 %v1036_v0, %v1026_v58  ;;  %v307_v58 = vsel %vm299_vm4, %v1036_v0, %v275_v50  ;;  %v343_v0 = vsel %vm331_vm8, 0.3, %v311_v32  ;;  %vm365_vm14 = vcmp.eq.s32.totalorder %v1066_v16, 3 }
  0x58   : > { %v1040_v2 = vpop.eup %659  ;;  %v296_v7 = vadd.f32 %v1038_v1, %v1030_v61  ;;  %v308_v60 = vsel %vm300_vm5, %v1038_v1, %v276_v34  ;;  %v336_v61 = vsel %vm332_vm9, %v1006_v45, %v304_v30  ;;  %v344_v1 = vsel %vm332_vm9, 0.3, %v312_v51 }
  0x59   : > { %v1042_v3 = vpop.eup %661  ;;  %v297_v9 = vadd.f32 %v1040_v2, %v1032_v62  ;;  %v337_v62 = vsel %vm333_vm10, %v1008_v46, %v305_v31  ;;  %v309_v44 = vsel %vm301_vm6, %v1040_v2, %v277_v56  ;;  %v345_v45 = vsel %vm333_vm10, 0.3, %v313_v37 }
  0x5a   : > { %v1046_v5 = vpop.eup %663  ;;  %v298_v11 = vadd.f32 %v1042_v3, %v1034_v63  ;;  %v338_v63 = vsel %vm334_vm11, %v1010_v47, %v306_v49  ;;  %v310_v46 = vsel %vm302_vm7, %v1042_v3, %v278_v57  ;;  %v346_v2 = vsel %vm334_vm11, 0.3, %v314_v39 }
  0x5b   : > { %v1051_v8 = vpop.eup %665  ;;  %v327_v14 = vadd.f32 %v1046_v5, %v295_v4  ;;  %v339_v47 = vsel %vm331_vm8, %v1046_v5, %v307_v58  ;;  %v367_v3 = vsel %vm363_vm12, %v1016_v52, %v335_v59  ;;  %vm366_vm15 = vcmp.eq.s32.totalorder %v1068_v17, 3 }
  0x5c   : > { %v1055_v10 = vpop.eup %667  ;;  %v328_v18 = vadd.f32 %v1051_v8, %v296_v7  ;;  %v340_v6 = vsel %vm332_vm9, %v1051_v8, %v308_v60  ;;  %v369_v52 = vsel %vm365_vm14, %v1020_v54, %v337_v62  ;;  %vm419_vm0 = vcmp.ge.s32.totalorder %v1061_v13, 0 }
  0x5d   : > { %v1059_v12 = vpop.eup %669  ;;  %v329_v19 = vadd.f32 %v1055_v10, %v297_v9  ;;  %v341_v5 = vsel %vm333_vm10, %v1055_v10, %v309_v44  ;;  %v368_v9 = vsel %vm364_vm13, %v1018_v53, %v336_v61  ;;  %v370_v53 = vsel %vm366_vm15, %v1022_v55, %v338_v63 }
  0x5e   : > { %v1072_v20 = vpop.eup %671  ;;  %v330_v21 = vadd.f32 %v1059_v12, %v298_v11  ;;  %vm420_vm1 = vcmp.ge.s32.totalorder %v1064_v15, 0  ;;  %vm423_vm2 = vcmp.lt.s32.totalorder %v1061_v13, 4  ;;  %vm424_vm3 = vcmp.lt.s32.totalorder %v1064_v15, 4 }
  0x5f   : > { %v1075_v22 = vpop.eup %673  ;;  %v359_v23 = vadd.f32 %v1072_v20, %v327_v14  ;;  %v342_v14 = vsel %vm334_vm11, %v1059_v12, %v310_v46  ;;  %v371_v10 = vsel %vm363_vm12, %v1072_v20, %v339_v47  ;;  %v375_v20 = vsel %vm363_vm12, 0.4, %v343_v0  ;;  %vm427_vm8 = vmand %vm419_vm0, %vm423_vm2 }
  0x60   : > { %v1079_v24 = vpop.eup %675  ;;  %v360_v25 = vadd.f32 %v1075_v22, %v328_v18  ;;  %vm421_vm4 = vcmp.ge.s32.totalorder %v1066_v16, 0  ;;  %vm425_vm5 = vcmp.lt.s32.totalorder %v1066_v16, 4  ;;  %vm422_vm6 = vcmp.ge.s32.totalorder %v1068_v17, 0  ;;  %vm428_vm9 = vmand %vm420_vm1, %vm424_vm3 }
  0x61   : > { %v1085_v26 = vpop.eup %677  ;;  %v361_v36 = vadd.f32 %v1079_v24, %v329_v19  ;;  %679 = vlog2.f32 %v359_v23  ;;  %v373_v54 = vsel %vm365_vm14, %v1079_v24, %v341_v5  ;;  %v378_v24 = vsel %vm366_vm15, 0.4, %v346_v2  ;;  %vm429_vm10 = vmand %vm421_vm4, %vm425_vm5 }
  0x62   : > { %v362_v41 = vadd.f32 %v1085_v26, %v330_v21  ;;  %681 = vlog2.f32 %v360_v25  ;;  %v372_v21 = vsel %vm364_vm13, %v1075_v22, %v340_v6  ;;  %v374_v55 = vsel %vm366_vm15, %v1085_v26, %v342_v14 }
  0x63   : > { %683 = vlog2.f32 %v361_v36  ;;  %v376_v22 = vsel %vm364_vm13, 0.4, %v344_v1  ;;  %vm426_vm7 = vcmp.lt.s32.totalorder %v1068_v17, 4 }
  0x64   : > { %685 = vlog2.f32 %v362_v41  ;;  %vm430_vm11 = vmand %vm422_vm6, %vm426_vm7 }
  0x65   : > { %687 = vrcp.f32 %v359_v23 }
  0x66   : > { %689 = vrcp.f32 %v360_v25 }
  0x67   : > { %691 = vrcp.f32 %v361_v36 }
  0x68   : > { %693 = vrcp.f32 %v362_v41  ;;  %v377_v41 = vsel %vm365_vm14, 0.4, %v345_v45 }
  0x6e   : > { %v680_v4 = vpop.eup %679 }
  0x6f   : > { %v682_v7 = vpop.eup %681  ;;  %v380_v8 = vmul.f32 0.6931472, %v680_v4 }
  0x70   : > { %v684_v11 = vpop.eup %683  ;;  %v382_v18 = vmul.f32 0.6931472, %v682_v7 }
  0x71   : > { %v686_v19 = vpop.eup %685  ;;  %v384_v23 = vmul.f32 0.6931472, %v684_v11  ;;  %v387_v12 = vsub.f32 %v367_v3, %v380_v8 }
  0x72   : > { %v688_v25 = vpop.eup %687  ;;  %v386_v27 = vmul.f32 0.6931472, %v686_v19  ;;  %v388_v33 = vsub.f32 %v368_v9, %v382_v18 }
  0x73   : > { %v690_v35 = vpop.eup %689  ;;  %v389_v36 = vsub.f32 %v369_v52, %v384_v23  ;;  %v392_v38 = vmul.f32 %v688_v25, %v371_v10  ;;  %v407_v30 = vmul.f32 %v387_v12, %v375_v20 }
  0x74   : > { %v692_v40 = vpop.eup %691  ;;  %v390_v42 = vsub.f32 %v370_v53, %v386_v27  ;;  %v394_v43 = vmul.f32 %v690_v35, %v372_v21  ;;  %v408_v49 = vmul.f32 %v388_v33, %v376_v22 }
  0x75   : > { %v694_v48 = vpop.eup %693  ;;  %v396_v28 = vmul.f32 %v692_v40, %v373_v54  ;;  %v399_v29 = vsub.f32 1.0, %v392_v38  ;;  %v409_v51 = vmul.f32 %v389_v36, %v377_v41 }
  0x76   : > { %v398_v26 = vmul.f32 %v694_v48, %v374_v55  ;;  %v400_v31 = vsub.f32 1.0, %v394_v43  ;;  %v410_v39 = vmul.f32 %v390_v42, %v378_v24 }
  0x77   : > { %v401_v50 = vsub.f32 1.0, %v396_v28  ;;  %v403_v32 = vmul.f32 %v399_v29, %v399_v29 }
  0x78   : > { %v402_v34 = vsub.f32 1.0, %v398_v26  ;;  %v404_v37 = vmul.f32 %v400_v31, %v400_v31 }
  0x79   : > { %v405_v56 = vmul.f32 %v401_v50, %v401_v50  ;;  %v411_v57 = vmul.f32 %v407_v30, %v403_v32 }
  0x7a   : > { %v406_v58 = vmul.f32 %v402_v34, %v402_v34  ;;  %v412_v59 = vmul.f32 %v408_v49, %v404_v37 }
  0x7b   : > { %v413_v60 = vmul.f32 %v409_v51, %v405_v56  ;;  %v415_v61 = vsub.f32 0.0, %v411_v57 }
  0x7c   : > { %v414_v62 = vmul.f32 %v410_v39, %v406_v58  ;;  %v416_v63 = vsub.f32 0.0, %v412_v59 }
  0x7d   : > { %v417_v44 = vsub.f32 0.0, %v413_v60  ;;  %v431_v16 = vsel %vm427_vm8, %v415_v61, 0.0 }
  0x7e   : > { %v418_v0 = vsub.f32 0.0, %v414_v62  ;;  %v432_v1 = vsel %vm428_vm9, %v416_v63, 0.0 }
  0x7f   : > { %v433_v45 = vsel %vm429_vm10, %v417_v44, 0.0  ;;  %v435_v46 = vadd.f32 %v432_v1, %v431_v16  ;;  %442 = sbr.rel (%p570_p7) target bundleno = 134 (0x86), region = 40 }
  0x80   : > { %v434_v47 = vsel %vm430_vm11, %v418_v0, 0.0 }
  0x81   : > { %v436_v17 = vadd.f32 %v435_v46, %v433_v45 }
  0x83   : > { %v437_v2 = vadd.f32 %v436_v17, %v434_v47 }
  0x84   : > { %v840_v13 = vmov 0.0  }
  0x85   : > { %443 = vst [vmem:[#allocation7] sm:$0xff] %v840_v13 }
  0x86 PF: > { %p1244_p9 = scmp.eq.s32.totalorder %s547_s15, 1  ;;  %s841_s18 = smov [#allocation7]  }
  0x87   : > { %s456_s19 = sshll.u32 %s841_s18, 4  ;;  %s457_s19 = int_to_ptr.vmem [resolvable:$true] %s456_s19 }
  0x88   : > { %s751_s23 = scalar_lea.vmem %s457_s19, 128  ;;  %p758_p5 = scmp.lt.s32.totalorder %s457_s19, %s457_s19 }
  0x89   : > { %p752_p10 = scmp.ne.s32.totalorder %s457_s19, %s751_s23  ;;  %p759_p6 = scmp.lt.s32.totalorder %s751_s23, %s751_s23 }
  0x8b   : > { %p753_p3 = pnand %p752_p10, %p1244_p9  ;;  %p760_p8 = por %p759_p6, %p758_p5 }
  0x8c   : > { %v444_v15 = vld [vmem:[#allocation7] sm:$0xff] }
  0x8d   : > { %v445_v4 = vadd.f32 %v444_v15, %v437_v2  ;;  %p754_p4 = pneg %p753_p3 }
  0x8f   : > { %446 = vst [vmem:[#allocation7] sm:$0xff] %v445_v4  ;;  %p761_p11 = pnand %p760_p8, %p754_p4 }
  0x91   : > { %764 = shalt.err (!%p761_p11)
}
  0x92   : > { %581 = dma.vmem_to_hbm [thread:$0]  (%p1244_p9), %s457_s19, 128, %s1279_s2, [#allocation4]  }
  0x93   : > { %808 = dma.done.wait (%p1244_p9), [#allocation4], 128  }
  0x94   : > { %810 = vsyncadd (%p1244_p9), [#allocation4], 4294967168 }
  0x95 PF: > { %s19_s14 = sadd.s32 1, %s833_s14   ;;  %s1285_s9 = smov %s817_s10 }
  0x96   : > { %p16_p12 = scmp.ge.s32.totalorder %s19_s14, 4   ;;  %s1286_s10 = smov %s821_s11 }
  0x97   : > { %s1287_s11 = smov %s908_s21  ;;  %s1288_s12 = smov %s829_s13 }
  0x98   : > { %s1289_s13 = smov %s1291_s16  ;;  %18 = sbr.rel (!%p16_p12) target bundleno = 7 (0x7), region = 86 }
  0x9d   :  { %469 = vsyncpa [#allocation3], 1 }
  0x9e   :  { %471 = vsyncpa [#allocation3 + $0x1], 1 }
  0x9f   :  { %472 = vsyncpa [#allocation6], 1 }
  0xa0   :  { %474 = vsyncpa [#allocation6 + $0x1], 1 }
  0xa1   :  { %475 = vsyncpa [#allocation4], 1 }
  0xa2   :  { %477 = vsyncpa [#allocation4 + $0x1], 1 }

</bundles_post_ra>
